<compile_context>
chip_gen: v7x
topology: tpu7x:2x2x1
jax: 0.10.0
libtpu: 0.0.40
codegen_flags: <defaults>
</compile_context>

<pallas_src>
import jax
import jax.numpy as jnp
from jax.experimental import pallas as pl
from jax.experimental.pallas import tpu as pltpu

BN_EPS = 1e-5
LANES = 128


def _round_up(x, m):
    return (x + m - 1) // m * m


# ---------------------------------------------------------------------------
# Fused BasicBlock kernel (one batch element per grid step).
# ---------------------------------------------------------------------------
def _make_block_kernel(ho, wo, cp, taps):
    p = ho * wo

    def kernel(x1_ref, xs_ref, w1_ref, w2_ref, wd_ref, b_ref, o_ref,
               h1p_ref, x2_ref):
        # conv1 + folded bn1 + relu: taps already folded into K -> single matmul.
        h1 = jnp.dot(x1_ref[0], w1_ref[...], preferred_element_type=jnp.float32)
        h1 = jnp.maximum(h1 + b_ref[0:1, :], 0.0)

        # Keep h1 on-chip: zero-padded image scratch (border = conv2's padding).
        h1p_ref[...] = jnp.zeros(h1p_ref.shape, h1p_ref.dtype)
        h1p_ref[1:1 + ho, 1:1 + wo, :] = h1.reshape(ho, wo, cp)

        # On-chip im2col for conv2: taps folded into K, lane-aligned column writes.
        for t, (di, dj) in enumerate(taps):
            tap = h1p_ref[di:di + ho, dj:dj + wo, :].reshape(p, cp)
            x2_ref[:, t * cp:(t + 1) * cp] = tap.astype(x2_ref.dtype)

        # conv2 + folded bn2: single matmul with K = kh*kw*Cp.
        acc = jnp.dot(x2_ref[...], w2_ref[...], preferred_element_type=jnp.float32)

        # identity / downsample path (1x1 conv; identity matrix when stride == 1).
        ident = jnp.dot(xs_ref[0], wd_ref[...], preferred_element_type=jnp.float32)

        # residual add + relu; lane-dense store (cp % 128 == 0).
        o_ref[0] = jnp.maximum(acc + ident + b_ref[1:2, :], 0.0).astype(o_ref.dtype)

    return kernel


def _fused_block_pallas(x1, xs, w1, w2, wd, biases, ho, wo, cp, kh, kw):
    n, p, k1 = x1.shape
    cin_s = xs.shape[-1]
    t = kh * kw
    taps = [(i, j) for i in range(kh) for j in range(kw)]
    kernel = _make_block_kernel(ho, wo, cp, taps)

    return pl.pallas_call(
        kernel,
        grid=(n,),
        in_specs=[
            pl.BlockSpec((1, p, k1), lambda i: (i, 0, 0)),      # conv1 im2col (bf16)
            pl.BlockSpec((1, p, cin_s), lambda i: (i, 0, 0)),   # strided x (identity/downsample)
            pl.BlockSpec((k1, cp), lambda i: (0, 0)),           # w1, BN folded, Cout padded
            pl.BlockSpec((t * cp, cp), lambda i: (0, 0)),       # w2, BN folded, Cin/Cout padded
            pl.BlockSpec((cin_s, cp), lambda i: (0, 0)),        # downsample weights / eye
            pl.BlockSpec((2, cp), lambda i: (0, 0)),            # biases [b1; b2 + b_ds]
        ],
        out_specs=pl.BlockSpec((1, p, cp), lambda i: (i, 0, 0)),
        out_shape=jax.ShapeDtypeStruct((n, p, cp), jnp.float32),
        scratch_shapes=[
            pltpu.VMEM((ho + kh - 1, wo + kw - 1, cp), jnp.float32),  # padded h1 image
            pltpu.VMEM((p, t * cp), x1.dtype),                        # conv2 im2col matrix
        ],
        compiler_params=pltpu.CompilerParams(
            dimension_semantics=("parallel",),
            vmem_limit_bytes=32 * 1024 * 1024,
        ),
    )(x1, xs, w1, w2, wd, biases)


# ---------------------------------------------------------------------------
# Plain-JAX plumbing: im2col (taps folded into K), BN folding, weight packing.
# ---------------------------------------------------------------------------
def _im2col(x_nhwc, kh, kw, stride, padding):
    """(N,H,W,C) -> (N, Ho*Wo, kh*kw*C)."""
    n, h, w, c = x_nhwc.shape
    xp = jnp.pad(x_nhwc, ((0, 0), (padding, padding), (padding, padding), (0, 0)))
    ho = (h + 2 * padding - kh) // stride + 1
    wo = (w + 2 * padding - kw) // stride + 1
    cols = []
    for i in range(kh):
        for j in range(kw):
            cols.append(xp[:, i:i + (ho - 1) * stride + 1:stride,
                              j:j + (wo - 1) * stride + 1:stride, :])
    stacked = jnp.stack(cols, axis=3)            # (N, Ho, Wo, T, C)
    return stacked.reshape(n, ho * wo, kh * kw * c), ho, wo


def _fold_bn(gamma, beta, mean, var, eps=BN_EPS):
    scale = gamma / jnp.sqrt(var + eps)
    return scale, beta - mean * scale


def _pack_w1(w_oihw, scale, cp):
    """(O,I,kh,kw) -> (kh*kw*I, Cp), BN scale folded into the O columns."""
    o, i, kh, kw = w_oihw.shape
    wt = jnp.transpose(w_oihw, (2, 3, 1, 0)) * scale[None, None, None, :]
    wt = jnp.pad(wt, ((0, 0), (0, 0), (0, 0), (0, cp - o)))
    return wt.reshape(kh * kw * i, cp)


def _pack_w2(w_oihw, scale, cp):
    """(O,I,kh,kw) -> (kh*kw*Cp, Cp): both channel axes padded to Cp."""
    o, i, kh, kw = w_oihw.shape
    wt = jnp.transpose(w_oihw, (2, 3, 1, 0)) * scale[None, None, None, :]
    wt = jnp.pad(wt, ((0, 0), (0, 0), (0, cp - i), (0, cp - o)))
    return wt.reshape(kh * kw * cp, cp)


def _pad_vec(v, cp):
    return jnp.pad(v, (0, cp - v.shape[0]))


def basic_block_forward(x_nchw, params, kernel_size, stride,
                        mxu_dtype=jnp.bfloat16):
    kh, kw = kernel_size
    assert (kh, kw) == (3, 3), "module uses padding=1 => 3x3 for a valid residual add"
    n, cin, h, w = x_nchw.shape
    planes = params["w1"].shape[0]
    cp = _round_up(planes, LANES)

    x = jnp.transpose(x_nchw, (0, 2, 3, 1))            # NCHW -> NHWC

    # conv1 input with taps folded into the contraction dim.
    x1, ho, wo = _im2col(x, kh, kw, stride, padding=1)
    p = ho * wo

    # strided input for the 1x1 downsample / identity path (no duplication).
    xs = x[:, ::stride, ::stride, :]
    assert xs.shape[1] == ho and xs.shape[2] == wo
    xs = xs.reshape(n, p, cin)

    # Fold BatchNorm (inference mode) into weights and biases.
    s1, b1 = _fold_bn(*params["bn1"])
    s2, b2 = _fold_bn(*params["bn2"])
    w1 = _pack_w1(params["w1"], s1, cp)
    w2 = _pack_w2(params["w2"], s2, cp)
    if stride != 1:
        sd, bd = _fold_bn(*params["bn_ds"])
        wd = jnp.transpose(params["w_ds"][:, :, 0, 0], (1, 0)) * sd[None, :]
    else:
        # Standard BasicBlock contract: identity path requires inplanes == planes.
        assert cin == planes, "stride==1 identity path requires inplanes == planes"
        wd = jnp.eye(cin, dtype=jnp.float32)
        bd = jnp.zeros((planes,), jnp.float32)
    wd = jnp.pad(wd, ((0, 0), (0, cp - planes)))
    biases = jnp.stack([_pad_vec(b1, cp), _pad_vec(b2 + bd, cp)], axis=0)

    # bf16 MXU operands; accumulation + epilogue stay f32 inside the kernel.
    x1, xs = x1.astype(mxu_dtype), xs.astype(mxu_dtype)
    w1, w2, wd = w1.astype(mxu_dtype), w2.astype(mxu_dtype), wd.astype(mxu_dtype)

    out = _fused_block_pallas(x1, xs, w1, w2, wd, biases, ho, wo, cp, kh, kw)
    out = out[:, :, :planes].reshape(n, ho, wo, planes)
    return jnp.transpose(out, (0, 3, 1, 2))            # NHWC -> NCHW


# ---------------------------------------------------------------------------
# Reference: module semantics (inference-mode BN). When mxu_dtype is given,
# conv operands are rounded the same way the Pallas kernel feeds the MXU.
# ---------------------------------------------------------------------------
def reference_forward(x_nchw, params, kernel_size, stride, mxu_dtype=None):
    def rnd(a):
        return a.astype(mxu_dtype).astype(jnp.float32) if mxu_dtype is not None else a

    def conv_bn(x, w, bn_p, s, pad):
        scale, bias = _fold_bn(*bn_p)
        w_eff = w * scale[:, None, None, None]
        y = jax.lax.conv_general_dilated(
            rnd(x), rnd(w_eff), (s, s), [(pad, pad), (pad, pad)],
            dimension_numbers=("NCHW", "OIHW", "NCHW"))
        return y + bias[None, :, None, None]

    out = jnp.maximum(conv_bn(x_nchw, params["w1"], params["bn1"], stride, 1), 0.0)
    out = conv_bn(out, params["w2"], params["bn2"], 1, 1)
    if stride != 1:
        identity = conv_bn(x_nchw, params["w_ds"], params["bn_ds"], stride, 0)
    else:
        identity = rnd(x_nchw)
    return jnp.maximum(out + identity, 0.0)


# ---------------------------------------------------------------------------
# Parameter initialization matching the PyTorch module's init_weights.
# ---------------------------------------------------------------------------
def _kaiming_normal_fan_out(key, cout, cin, kh, kw):
    fan_out = cout * kh * kw
    std = (2.0 / fan_out) ** 0.5
    return std * jax.random.normal(key, (cout, cin, kh, kw), jnp.float32)


def _default_bn(planes):
    # gamma=1, beta=0 (init_weights); running_mean=0, running_var=1 (defaults).
    return (jnp.ones((planes,), jnp.float32), jnp.zeros((planes,), jnp.float32),
            jnp.zeros((planes,), jnp.float32), jnp.ones((planes,), jnp.float32))


if __name__ == "__main__":
    ks = (3, 3)
    for inplanes, planes, stride in [(4, 8, 2), (8, 8, 1)]:
        key = jax.random.PRNGKey(0)
        kx, k1, k2, kd = jax.random.split(key, 4)
        x = jax.random.normal(kx, (2, inplanes, 16, 16), jnp.float32)
        params = {
            "w1": _kaiming_normal_fan_out(k1, planes, inplanes, *ks),
            "w2": _kaiming_normal_fan_out(k2, planes, planes, *ks),
            "bn1": _default_bn(planes),
            "bn2": _default_bn(planes),
        }
        if stride != 1:
            params["w_ds"] = _kaiming_normal_fan_out(kd, planes, inplanes, 1, 1)
            params["bn_ds"] = _default_bn(planes)

        y = jax.block_until_ready(basic_block_forward(x, params, ks, stride))
        y_ref = reference_forward(x, params, ks, stride, mxu_dtype=jnp.bfloat16)

        assert y.shape == y_ref.shape, (y.shape, y_ref.shape)
        max_err = float(jnp.max(jnp.abs(y - y_ref)))
        assert jnp.allclose(y, y_ref, rtol=1e-2, atol=1e-2), max_err
    print("KERNEL_OK")
</pallas_src>

<mosaic_0001>
module attributes {stable_mosaic.version = 11 : i64} {
  func.func @kernel(%arg0: i32, %arg1: memref<1x64x36xbf16, #tpu.memory_space<vmem>>, %arg2: memref<1x64x4xbf16, #tpu.memory_space<vmem>>, %arg3: memref<36x128xbf16, #tpu.memory_space<vmem>>, %arg4: memref<1152x128xbf16, #tpu.memory_space<vmem>>, %arg5: memref<4x128xbf16, #tpu.memory_space<vmem>>, %arg6: memref<2x128xf32, #tpu.memory_space<vmem>>, %arg7: memref<1x64x128xf32, #tpu.memory_space<vmem>>, %arg8: memref<10x10x128xf32, #tpu.memory_space<vmem>>, %arg9: memref<64x1152xbf16, #tpu.memory_space<vmem>>) attributes {dimension_semantics = [#tpu.dimension_semantics<parallel>], iteration_bounds = array<i64: 2>, scalar_prefetch = 0 : i64, scratch_operands = 2 : i64, tpu.core_type = #tpu.core_type<tc>, window_params = [{transform_indices = @transform_0, window_bounds = array<i64: 1, 64, 36>}, {transform_indices = @transform_1, window_bounds = array<i64: 1, 64, 4>}, {pipeline_mode = #tpu.pipeline_mode<synchronous>, transform_indices = @transform_2, window_bounds = array<i64: 36, 128>}, {pipeline_mode = #tpu.pipeline_mode<synchronous>, transform_indices = @transform_3, window_bounds = array<i64: 1152, 128>}, {pipeline_mode = #tpu.pipeline_mode<synchronous>, transform_indices = @transform_4, window_bounds = array<i64: 4, 128>}, {pipeline_mode = #tpu.pipeline_mode<synchronous>, transform_indices = @transform_5, window_bounds = array<i64: 2, 128>}, {transform_indices = @transform_6, window_bounds = array<i64: 1, 64, 128>}]} {
    %c0 = arith.constant 0 : index
    %c0_0 = arith.constant 0 : index
    %c0_1 = arith.constant 0 : index
    %0 = vector.load %arg1[%c0, %c0_0, %c0_1] : memref<1x64x36xbf16, #tpu.memory_space<vmem>>, vector<1x64x36xbf16>
    %1 = vector.shape_cast %0 : vector<1x64x36xbf16> to vector<64x36xbf16>
    %c0_2 = arith.constant 0 : index
    %c0_3 = arith.constant 0 : index
    %2 = vector.load %arg3[%c0_2, %c0_3] : memref<36x128xbf16, #tpu.memory_space<vmem>>, vector<36x128xbf16>
    %cst = arith.constant dense<0.000000e+00> : vector<64x128xf32>
    %3 = tpu.matmul %1, %2, %cst {dimension_numbers = #tpu.dot_dimension_numbers<[1], [0], [0], [1], [0, 0, 1, 1], [], []>} : vector<64x36xbf16>, vector<36x128xbf16>, vector<64x128xf32> -> vector<64x128xf32>
    %c0_4 = arith.constant 0 : index
    %c0_5 = arith.constant 0 : index
    %4 = vector.load %arg6[%c0_4, %c0_5] : memref<2x128xf32, #tpu.memory_space<vmem>>, vector<1x128xf32>
    %5 = vector.broadcast %4 : vector<1x128xf32> to vector<64x128xf32>
    %6 = arith.addf %3, %5 : vector<64x128xf32>
    %cst_6 = arith.constant 0.000000e+00 : f32
    %7 = vector.broadcast %cst_6 : f32 to vector<64x128xf32>
    %8 = arith.maximumf %6, %7 : vector<64x128xf32>
    %cst_7 = arith.constant 0.000000e+00 : f32
    %9 = vector.broadcast %cst_7 : f32 to vector<10x10x128xf32>
    %c0_8 = arith.constant 0 : index
    %c0_9 = arith.constant 0 : index
    %c0_10 = arith.constant 0 : index
    %10 = vector.load %arg8[%c0_8, %c0_9, %c0_10] : memref<10x10x128xf32, #tpu.memory_space<vmem>>, vector<10x10x128xf32>
    tpu.vector_store %arg8[%c0_8, %c0_9, %c0_10], %9 {strides = array<i32>} : memref<10x10x128xf32, #tpu.memory_space<vmem>>, vector<10x10x128xf32>,
    %11 = vector.shape_cast %8 : vector<64x128xf32> to vector<8x8x128xf32>
    %c1 = arith.constant 1 : index
    %c1_11 = arith.constant 1 : index
    %c0_12 = arith.constant 0 : index
    %12 = vector.load %arg8[%c1, %c1_11, %c0_12] : memref<10x10x128xf32, #tpu.memory_space<vmem>>, vector<8x8x128xf32>
    tpu.vector_store %arg8[%c1, %c1_11, %c0_12], %11 {strides = array<i32>} : memref<10x10x128xf32, #tpu.memory_space<vmem>>, vector<8x8x128xf32>,
    %c0_13 = arith.constant 0 : index
    %c0_14 = arith.constant 0 : index
    %c0_15 = arith.constant 0 : index
    %13 = vector.load %arg8[%c0_13, %c0_14, %c0_15] : memref<10x10x128xf32, #tpu.memory_space<vmem>>, vector<8x8x128xf32>
    %14 = vector.shape_cast %13 : vector<8x8x128xf32> to vector<64x128xf32>
    %15 = arith.truncf %14 : vector<64x128xf32> to vector<64x128xbf16>
    %c0_16 = arith.constant 0 : index
    %c0_17 = arith.constant 0 : index
    %16 = vector.load %arg9[%c0_16, %c0_17] : memref<64x1152xbf16, #tpu.memory_space<vmem>>, vector<64x128xbf16>
    tpu.vector_store %arg9[%c0_16, %c0_17], %15 {strides = array<i32>} : memref<64x1152xbf16, #tpu.memory_space<vmem>>, vector<64x128xbf16>,
    %c0_18 = arith.constant 0 : index
    %c1_19 = arith.constant 1 : index
    %c0_20 = arith.constant 0 : index
    %17 = vector.load %arg8[%c0_18, %c1_19, %c0_20] : memref<10x10x128xf32, #tpu.memory_space<vmem>>, vector<8x8x128xf32>
    %18 = vector.shape_cast %17 : vector<8x8x128xf32> to vector<64x128xf32>
    %19 = arith.truncf %18 : vector<64x128xf32> to vector<64x128xbf16>
    %c0_21 = arith.constant 0 : index
    %c128 = arith.constant 128 : index
    %20 = vector.load %arg9[%c0_21, %c128] : memref<64x1152xbf16, #tpu.memory_space<vmem>>, vector<64x128xbf16>
    tpu.vector_store %arg9[%c0_21, %c128], %19 {strides = array<i32>} : memref<64x1152xbf16, #tpu.memory_space<vmem>>, vector<64x128xbf16>,
    %c0_22 = arith.constant 0 : index
    %c2 = arith.constant 2 : index
    %c0_23 = arith.constant 0 : index
    %21 = vector.load %arg8[%c0_22, %c2, %c0_23] : memref<10x10x128xf32, #tpu.memory_space<vmem>>, vector<8x8x128xf32>
    %22 = vector.shape_cast %21 : vector<8x8x128xf32> to vector<64x128xf32>
    %23 = arith.truncf %22 : vector<64x128xf32> to vector<64x128xbf16>
    %c0_24 = arith.constant 0 : index
    %c256 = arith.constant 256 : index
    %24 = vector.load %arg9[%c0_24, %c256] : memref<64x1152xbf16, #tpu.memory_space<vmem>>, vector<64x128xbf16>
    tpu.vector_store %arg9[%c0_24, %c256], %23 {strides = array<i32>} : memref<64x1152xbf16, #tpu.memory_space<vmem>>, vector<64x128xbf16>,
    %c1_25 = arith.constant 1 : index
    %c0_26 = arith.constant 0 : index
    %c0_27 = arith.constant 0 : index
    %25 = vector.load %arg8[%c1_25, %c0_26, %c0_27] : memref<10x10x128xf32, #tpu.memory_space<vmem>>, vector<8x8x128xf32>
    %26 = vector.shape_cast %25 : vector<8x8x128xf32> to vector<64x128xf32>
    %27 = arith.truncf %26 : vector<64x128xf32> to vector<64x128xbf16>
    %c0_28 = arith.constant 0 : index
    %c384 = arith.constant 384 : index
    %28 = vector.load %arg9[%c0_28, %c384] : memref<64x1152xbf16, #tpu.memory_space<vmem>>, vector<64x128xbf16>
    tpu.vector_store %arg9[%c0_28, %c384], %27 {strides = array<i32>} : memref<64x1152xbf16, #tpu.memory_space<vmem>>, vector<64x128xbf16>,
    %c1_29 = arith.constant 1 : index
    %c1_30 = arith.constant 1 : index
    %c0_31 = arith.constant 0 : index
    %29 = vector.load %arg8[%c1_29, %c1_30, %c0_31] : memref<10x10x128xf32, #tpu.memory_space<vmem>>, vector<8x8x128xf32>
    %30 = vector.shape_cast %29 : vector<8x8x128xf32> to vector<64x128xf32>
    %31 = arith.truncf %30 : vector<64x128xf32> to vector<64x128xbf16>
    %c0_32 = arith.constant 0 : index
    %c512 = arith.constant 512 : index
    %32 = vector.load %arg9[%c0_32, %c512] : memref<64x1152xbf16, #tpu.memory_space<vmem>>, vector<64x128xbf16>
    tpu.vector_store %arg9[%c0_32, %c512], %31 {strides = array<i32>} : memref<64x1152xbf16, #tpu.memory_space<vmem>>, vector<64x128xbf16>,
    %c1_33 = arith.constant 1 : index
    %c2_34 = arith.constant 2 : index
    %c0_35 = arith.constant 0 : index
    %33 = vector.load %arg8[%c1_33, %c2_34, %c0_35] : memref<10x10x128xf32, #tpu.memory_space<vmem>>, vector<8x8x128xf32>
    %34 = vector.shape_cast %33 : vector<8x8x128xf32> to vector<64x128xf32>
    %35 = arith.truncf %34 : vector<64x128xf32> to vector<64x128xbf16>
    %c0_36 = arith.constant 0 : index
    %c640 = arith.constant 640 : index
    %36 = vector.load %arg9[%c0_36, %c640] : memref<64x1152xbf16, #tpu.memory_space<vmem>>, vector<64x128xbf16>
    tpu.vector_store %arg9[%c0_36, %c640], %35 {strides = array<i32>} : memref<64x1152xbf16, #tpu.memory_space<vmem>>, vector<64x128xbf16>,
    %c2_37 = arith.constant 2 : index
    %c0_38 = arith.constant 0 : index
    %c0_39 = arith.constant 0 : index
    %37 = vector.load %arg8[%c2_37, %c0_38, %c0_39] : memref<10x10x128xf32, #tpu.memory_space<vmem>>, vector<8x8x128xf32>
    %38 = vector.shape_cast %37 : vector<8x8x128xf32> to vector<64x128xf32>
    %39 = arith.truncf %38 : vector<64x128xf32> to vector<64x128xbf16>
    %c0_40 = arith.constant 0 : index
    %c768 = arith.constant 768 : index
    %40 = vector.load %arg9[%c0_40, %c768] : memref<64x1152xbf16, #tpu.memory_space<vmem>>, vector<64x128xbf16>
    tpu.vector_store %arg9[%c0_40, %c768], %39 {strides = array<i32>} : memref<64x1152xbf16, #tpu.memory_space<vmem>>, vector<64x128xbf16>,
    %c2_41 = arith.constant 2 : index
    %c1_42 = arith.constant 1 : index
    %c0_43 = arith.constant 0 : index
    %41 = vector.load %arg8[%c2_41, %c1_42, %c0_43] : memref<10x10x128xf32, #tpu.memory_space<vmem>>, vector<8x8x128xf32>
    %42 = vector.shape_cast %41 : vector<8x8x128xf32> to vector<64x128xf32>
    %43 = arith.truncf %42 : vector<64x128xf32> to vector<64x128xbf16>
    %c0_44 = arith.constant 0 : index
    %c896 = arith.constant 896 : index
    %44 = vector.load %arg9[%c0_44, %c896] : memref<64x1152xbf16, #tpu.memory_space<vmem>>, vector<64x128xbf16>
    tpu.vector_store %arg9[%c0_44, %c896], %43 {strides = array<i32>} : memref<64x1152xbf16, #tpu.memory_space<vmem>>, vector<64x128xbf16>,
    %c2_45 = arith.constant 2 : index
    %c2_46 = arith.constant 2 : index
    %c0_47 = arith.constant 0 : index
    %45 = vector.load %arg8[%c2_45, %c2_46, %c0_47] : memref<10x10x128xf32, #tpu.memory_space<vmem>>, vector<8x8x128xf32>
    %46 = vector.shape_cast %45 : vector<8x8x128xf32> to vector<64x128xf32>
    %47 = arith.truncf %46 : vector<64x128xf32> to vector<64x128xbf16>
    %c0_48 = arith.constant 0 : index
    %c1024 = arith.constant 1024 : index
    %48 = vector.load %arg9[%c0_48, %c1024] : memref<64x1152xbf16, #tpu.memory_space<vmem>>, vector<64x128xbf16>
    tpu.vector_store %arg9[%c0_48, %c1024], %47 {strides = array<i32>} : memref<64x1152xbf16, #tpu.memory_space<vmem>>, vector<64x128xbf16>,
    %c0_49 = arith.constant 0 : index
    %c0_50 = arith.constant 0 : index
    %49 = vector.load %arg9[%c0_49, %c0_50] : memref<64x1152xbf16, #tpu.memory_space<vmem>>, vector<64x1152xbf16>
    %c0_51 = arith.constant 0 : index
    %c0_52 = arith.constant 0 : index
    %50 = vector.load %arg4[%c0_51, %c0_52] : memref<1152x128xbf16, #tpu.memory_space<vmem>>, vector<1152x128xbf16>
    %cst_53 = arith.constant dense<0.000000e+00> : vector<64x128xf32>
    %51 = tpu.matmul %49, %50, %cst_53 {dimension_numbers = #tpu.dot_dimension_numbers<[1], [0], [0], [1], [0, 0, 1, 1], [], []>} : vector<64x1152xbf16>, vector<1152x128xbf16>, vector<64x128xf32> -> vector<64x128xf32>
    %c0_54 = arith.constant 0 : index
    %c0_55 = arith.constant 0 : index
    %c0_56 = arith.constant 0 : index
    %52 = vector.load %arg2[%c0_54, %c0_55, %c0_56] : memref<1x64x4xbf16, #tpu.memory_space<vmem>>, vector<1x64x4xbf16>
    %53 = vector.shape_cast %52 : vector<1x64x4xbf16> to vector<64x4xbf16>
    %c0_57 = arith.constant 0 : index
    %c0_58 = arith.constant 0 : index
    %54 = vector.load %arg5[%c0_57, %c0_58] : memref<4x128xbf16, #tpu.memory_space<vmem>>, vector<4x128xbf16>
    %cst_59 = arith.constant dense<0.000000e+00> : vector<64x128xf32>
    %55 = tpu.matmul %53, %54, %cst_59 {dimension_numbers = #tpu.dot_dimension_numbers<[1], [0], [0], [1], [0, 0, 1, 1], [], []>} : vector<64x4xbf16>, vector<4x128xbf16>, vector<64x128xf32> -> vector<64x128xf32>
    %56 = arith.addf %51, %55 : vector<64x128xf32>
    %c1_60 = arith.constant 1 : index
    %c0_61 = arith.constant 0 : index
    %57 = vector.load %arg6[%c1_60, %c0_61] : memref<2x128xf32, #tpu.memory_space<vmem>>, vector<1x128xf32>
    %58 = vector.broadcast %57 : vector<1x128xf32> to vector<64x128xf32>
    %59 = arith.addf %56, %58 : vector<64x128xf32>
    %cst_62 = arith.constant 0.000000e+00 : f32
    %60 = vector.broadcast %cst_62 : f32 to vector<64x128xf32>
    %61 = arith.maximumf %59, %60 : vector<64x128xf32>
    %c0_63 = arith.constant 0 : index
    %c0_64 = arith.constant 0 : index
    %c0_65 = arith.constant 0 : index
    %62 = vector.load %arg7[%c0_63, %c0_64, %c0_65] : memref<1x64x128xf32, #tpu.memory_space<vmem>>, vector<1x64x128xf32>
    %63 = vector.shape_cast %62 : vector<1x64x128xf32> to vector<64x128xf32>
    %64 = vector.shape_cast %61 : vector<64x128xf32> to vector<1x64x128xf32>
    tpu.vector_store %arg7[%c0_63, %c0_64, %c0_65], %64 {strides = array<i32>} : memref<1x64x128xf32, #tpu.memory_space<vmem>>, vector<1x64x128xf32>,
    return
  }
  func.func @transform_0(%arg0: i32) -> (i32, i32, i32) {
    %c0_i32 = arith.constant 0 : i32
    %c0_i32_0 = arith.constant 0 : i32
    %c0_i32_1 = arith.constant 0 : i32
    return %arg0, %c0_i32, %c0_i32_0 : i32, i32, i32
  }
  func.func @transform_1(%arg0: i32) -> (i32, i32, i32) {
    %c0_i32 = arith.constant 0 : i32
    %c0_i32_0 = arith.constant 0 : i32
    %c0_i32_1 = arith.constant 0 : i32
    return %arg0, %c0_i32, %c0_i32_0 : i32, i32, i32
  }
  func.func @transform_2(%arg0: i32) -> (i32, i32) {
    %c0_i32 = arith.constant 0 : i32
    %c0_i32_0 = arith.constant 0 : i32
    %c0_i32_1 = arith.constant 0 : i32
    return %c0_i32, %c0_i32_0 : i32, i32
  }
  func.func @transform_3(%arg0: i32) -> (i32, i32) {
    %c0_i32 = arith.constant 0 : i32
    %c0_i32_0 = arith.constant 0 : i32
    %c0_i32_1 = arith.constant 0 : i32
    return %c0_i32, %c0_i32_0 : i32, i32
  }
  func.func @transform_4(%arg0: i32) -> (i32, i32) {
    %c0_i32 = arith.constant 0 : i32
    %c0_i32_0 = arith.constant 0 : i32
    %c0_i32_1 = arith.constant 0 : i32
    return %c0_i32, %c0_i32_0 : i32, i32
  }
  func.func @transform_5(%arg0: i32) -> (i32, i32) {
    %c0_i32 = arith.constant 0 : i32
    %c0_i32_0 = arith.constant 0 : i32
    %c0_i32_1 = arith.constant 0 : i32
    return %c0_i32, %c0_i32_0 : i32, i32
  }
  func.func @transform_6(%arg0: i32) -> (i32, i32, i32) {
    %c0_i32 = arith.constant 0 : i32
    %c0_i32_0 = arith.constant 0 : i32
    %c0_i32_1 = arith.constant 0 : i32
    return %arg0, %c0_i32, %c0_i32_0 : i32, i32, i32
  }
}

</mosaic_0001>

<bundles_post_ra>
// kernel: tpu_custom_call.1
= control target key start
LH: loop header
LB: loop body
LE: loop exit
PB: predicated region body
PF: predicated region fallthrough
CT: control target
= control target key end

     0   :  { %11 = vsyncpa [#allocation5], 0  ;;  %s2757_s0 = inlined_call_operand.vmem [shape: bf16[2,64,36], index: 0, kind: input, shape index: {}]   ;;  %s2758_s1 = inlined_call_operand.vmem [shape: bf16[2,64,4], index: 1, kind: input, shape index: {}]   ;;  %s2759_s2 = inlined_call_operand.vmem [shape: bf16[36,128], index: 2, kind: input, shape index: {}]   ;;  %s2760_s3 = inlined_call_operand.hbm [shape: bf16[1152,128], index: 3, kind: input, shape index: {}]   ;;  %s2761_s4 = inlined_call_operand.vmem [shape: bf16[4,128], index: 4, kind: input, shape index: {}]   ;;  %s2762_s5 = inlined_call_operand.vmem [shape: f32[2,128], index: 5, kind: input, shape index: {}]   ;;  %s2763_s6 = inlined_call_operand.hbm [shape: f32[2,64,128], index: 6, kind: output, shape index: {}]  }
   0x1   :  { %12 = vsyncpa [#allocation6], 0 }
   0x2   :  { %14 = vsyncpa [#allocation6 + $0x1], 0  ;;  %s2441_s21 = smov 0   ;;  %s2443_s22 = smov 0  }
   0x3   :  { %s2445_s23 = smov 0   ;;  %s2447_s24 = smov 0  }
   0x4 LB: > { %s2462_s25 = sadd.s32 4294967295, %s2397_s24   ;;  %s1779_s26 = sadd.s32 4294967294, %s2397_s24   ;;  %s2397_s24 = sphi %s2447_s24, %s2779_s24   ;;  %s2393_s23 = sphi %s2445_s23, %s2778_s23   ;;  %s2389_s22 = sphi %s2443_s22, %s2777_s22   ;;  %s2385_s21 = sphi %s2441_s21, %s2776_s21  }
   0x5   : > { %s2466_s27 = sadd.s32 1, %s2397_s24   ;;  %s163_s28 = sadd.s32 1, %s2393_s23 }
   0x6   : > { %s160_s29 = ssub.s32 %s2397_s24, %s2466_s27  ;;  %p173_p0 = scmp.ne.s32.totalorder %s2393_s23, %s2389_s22 }
   0x7   : > { %p161_p1 = scmp.eq.s32.totalorder %s160_s29, 0  ;;  %p174_p2 = scmp.eq.s32.totalorder %s2462_s25, 1 }
   0x8   : > { %p179_p3 = scmp.ne.s32.totalorder %s2389_s22, %s2385_s21  ;;  %p180_p4 = scmp.eq.s32.totalorder %s1779_s26, 1 }
   0x9   : > { %s2477_s30 = scalar_select %p161_p1, %s2393_s23, %s163_s28  }
   0xa   : > { %p2479_p5 = por %p174_p2, %p173_p0  ;;  %p2483_p6 = por %p180_p4, %p179_p3 }
   0xb   : > { %p1780_p7 = scmp.ge.s32.totalorder %s2397_s24, 1  ;;  %p187_p8 = scmp.lt.s32.totalorder %s2397_s24, 3 }
   0xc   : > { %s2767_s7 = scalar_select %p2479_p5, 1, 0 }
   0xd   : > { %s2768_s8 = scalar_select %p2483_p6, 1, 0 }
   0xe   : > { %p2764_p9 = scmp.eq.s32.totalorder %s2462_s25, 0  ;;  %p2490_p10 = pnand %p1780_p7, %p187_p8 }
   0xf   : > { %s2399_s10 = smov [#allocation4]   ;;  %s2303_s15 = scalar_lea.hbm %s2760_s3, 9216 }
  0x10   : > { %s2769_s9 = scalar_select %p2490_p10, 1, 0 }
  0x11   : > { %s202_s11 = sshll.u32 %s2399_s10, 4  ;;  %p2171_p11 = pneg %p2490_p10  ;;  %s203_s11 = int_to_ptr.vmem [resolvable:$true] %s202_s11 }
  0x12   : > { %p2304_p13 = scmp.ne.s32.totalorder %s2760_s3, %s2303_s15  ;;  %p2310_p3 = scmp.lt.u32.totalorder %s2303_s15, %s2760_s3 }
  0x13   : > { %p2498_p12 = pnand %p2764_p9, %p2171_p11 }
  0x15   : > { %p2305_p0 = pneg %p2498_p12 }
  0x17   : > { %p2306_p1 = pnand %p2305_p0, %p2304_p13 }
  0x19   : > { %p2307_p2 = pneg %p2306_p1 }
  0x1b   : > { %p2312_p4 = pnand %p2310_p3, %p2307_p2 }
  0x1d   : > { %2315 = shalt.err (!%p2312_p4)
}
  0x1e   : > { %s2316_s20 = scalar_lea.vmem %s203_s11, 9216  ;;  %p2324_p9 = scmp.lt.s32.totalorder %s203_s11, %s203_s11 }
  0x1f   : > { %p2317_p7 = scmp.ne.s32.totalorder %s203_s11, %s2316_s20  ;;  %p2325_p6 = scmp.lt.s32.totalorder %s2316_s20, %s2316_s20 }
  0x21   : > { %p2319_p8 = pnand %p2317_p7, %p2305_p0  ;;  %p2326_p5 = por %p2325_p6, %p2324_p9 }
  0x23   : > { %p2320_p11 = pneg %p2319_p8 }
  0x25   : > { %p2327_p10 = pnand %p2326_p5, %p2320_p11 }
  0x27   : > { %2330 = shalt.err (!%p2327_p10)
}
  0x28   : > { %s2400_s26 = smov 64   ;;  %s2401_s28 = smov 4  }
  0x29   : > { %2174 = dma.hbm_to_vmem [thread:$0]  (!%p2498_p12), %s2760_s3, 9216, %s203_s11, [#allocation5], %s2400_s26, %s2400_s26, %s2401_s28  }
  0x2a   : > { %p2771_p13 = scmp.ne.s32.totalorder %s2769_s9, 0 }
  0x2b   : > { %p2772_p1 = scmp.eq.s32.totalorder (!%p2771_p13), %s2462_s25, 0 }
  0x2c   : > { %240 = sbr.rel (%p2771_p13) target bundleno = 600 (0x258), region = 44 }
  0x33   : > { %2376 = dma.done.wait (%p2772_p1), [#allocation5], 9216   ;;  %p2773_p0 = pmov %p2772_p1 }
  0x34   : > { %p275_p5 = scmp.lt.s32.totalorder %s2462_s25, 1  ;;  %v2220_v0 = vld [vmem:[%s2759_s2] sm:$0xff]   ;;  %v2221_v1 = vld [vmem:[%s2759_s2 + $0x8] sm:$0xff]   ;;  %vm339_vm0 = vcmask 293888   ;;  %vm352_vm1 = vcmask 1041408   ;;  %vm812_vm2 = vcmask 31744  }
  0x35   : > { %2378 = vsyncadd (%p2773_p0), [#allocation5], 4294958080  ;;  %2075 = vmatprep.subr.bf16.mxu0 %v2220_v0  ;;  %v2222_v2 = vld [vmem:[%s2759_s2 + $0x10] ss:$0 sps:$4 sm:$0x33]   ;;  %v2228_v9 = vld [vmem:[#allocation4 + $0x40] sm:$0xff]  }
  0x36   : > { %s276_s13 = scalar_select %p275_p5, %s2462_s25, 1  ;;  %2076 = vmatpush3.bf16.msra.mxu0 %v2220_v0  ;;  %v791_v4 = vld [vmem:[%s2761_s4] sm:$0x3]  ;;  %v354_v7 = vsel %vm352_vm1, %v2222_v2, 0  ;;  %v2232_v14 = vld [vmem:[#allocation4 + $0x48] sm:$0xff]   ;;  %v2236_v19 = vld [vmem:[#allocation4 + $0x50] sm:$0xff]  }
  0x37   : > { %2077 = vmatprep.subr.bf16.mxu0 %v2221_v1  ;;  %2164 = vmatprep.subr.msk.bf16.mxu1 %vm352_vm1, %v791_v4  ;;  %v826_v5 = vsel %vm352_vm1, %v791_v4, 0  ;;  %v2230_v12 = vld [vmem:[#allocation4] sm:$0xff]   ;;  %v2234_v16 = vld [vmem:[#allocation4 + $0x8] sm:$0xff]   ;;  %v2238_v21 = vld [vmem:[#allocation4 + $0x10] sm:$0xff]   ;;  %v2402_v27 = vmov 0.0   ;;  %s272_s12 = sand.u32 1, %s2389_s22  }
  0x38   : > { %s1888_s14 = sshll.u32 %s276_s13, 5  ;;  %2090 = vmatpush3.bf16.msra.mxu1 %v826_v5  ;;  %v2231_v13 = vld [vmem:[#allocation4 + $0xc0] sm:$0xff]   ;;  %v2235_v17 = vld [vmem:[#allocation4 + $0xc8] sm:$0xff]   ;;  %v2239_v22 = vld [vmem:[#allocation4 + $0xd0] sm:$0xff]   ;;  %435 = vst [vmem:[#allocation2 + $0x30] sm:$0xff] %v2402_v27  ;;  %s1785_s17 = sshll.u32 %s272_s12, 6 }
  0x39   : > { %s2529_s16 = scalar_lea.vmem %s2757_s0, %s1888_s14  ;;  %s2545_s29 = scalar_lea.vmem %s2758_s1, %s1888_s14  ;;  %1903 = vmatprep.subr.bf16.mxu1 %v2228_v9  ;;  %v2233_v15 = vld [vmem:[#allocation4 + $0x80] sm:$0xff]   ;;  %v2237_v20 = vld [vmem:[#allocation4 + $0x88] sm:$0xff]   ;;  %v2240_v23 = vld [vmem:[#allocation4 + $0x58] sm:$0xff]   ;;  %436 = vst [vmem:[#allocation2 + $0x38] sm:$0x3] %v2402_v27 }
  0x3a   : > { %v2223_v3 = vld [vmem:[%s2529_s16] sm:$0xff]   ;;  %2078 = vmatpush3.bf16.msra.mxu0 %v2221_v1  ;;  %v2224_v8 = vld [vmem:[%s2529_s16 + $0x8] sm:$0xff]   ;;  %v2225_v10 = vld [vmem:[%s2529_s16 + $0x10] sm:$0xff]   ;;  %429 = vst [vmem:[#allocation2] sm:$0xff] %v2402_v27  ;;  %s2695_s9 = scalar_lea.vmem [#allocation7], %s1785_s17  ;;  %s1890_s19 = sshll.u32 %s2462_s25, 10 }
  0x3b   : > { %2081 = vmatprep.mubr.msk.bf16.mxu0 %vm339_vm0, %v2223_v3  ;;  %v2227_v6 = vld [vmem:[%s2545_s29] sm:$0xff]   ;;  %2163 = vmatprep.subr.msk.bf16.mxu0 %vm352_vm1, %v2222_v2  ;;  %v2229_v11 = vld [vmem:[%s2545_s29 + $0x8] sm:$0xff]   ;;  %v2226_v18 = vld [vmem:[%s2529_s16 + $0x18] sm:$0xff]   ;;  %430 = vst [vmem:[#allocation2 + $0x8] sm:$0x3] %v2402_v27  ;;  %s1693_s18 = sshll.u32 %s2695_s9, 4  ;;  %s2710_s28 = scalar_lea.hbm %s2763_s6, %s1890_s19  ;;  %s2703_s18 = int_to_ptr.vmem [resolvable:$true] %s1693_s18 }
  0x3c   : > { %2091 = vmatprep.mubr.msk.bf16.mxu1 %vm812_vm2, %v2227_v6  ;;  %v2241_v24 = vld [vmem:[#allocation4 + $0x90] sm:$0xff]   ;;  %v2242_v25 = vld [vmem:[#allocation4 + $0x18] sm:$0xff]   ;;  %431 = vst [vmem:[#allocation2 + $0x10] sm:$0xff] %v2402_v27  ;;  %432 = vst [vmem:[#allocation2 + $0x18] sm:$0x3] %v2402_v27  ;;  %s2716_s25 = scalar_lea.sflag [#allocation6], %s272_s12 }
  0x3d   : > { %2092 = vmatmul.mubr.msk.bf16.vlgmr.msra.gmra.mrb[0].mxu1 %vm812_vm2, %v2229_v11  ;;  %v2243_v26 = vld [vmem:[#allocation4 + $0xd8] sm:$0xff]   ;;  %433 = vst [vmem:[#allocation2 + $0x20] sm:$0xff] %v2402_v27  ;;  %434 = vst [vmem:[#allocation2 + $0x28] sm:$0x3] %v2402_v27  ;;  %v2244_v28 = vld [vmem:[#allocation4 + $0x60] sm:$0xff]   ;;  %p2774_p9 = scmp.ne.s32.totalorder %s2767_s7, 0 }
  0x3e   : > { %2080 = vmatpush3.bf16.msra.mxu0 %v354_v7  ;;  %1904 = vmatpush3.bf16.msra.mxu1 %v2230_v12  ;;  %437 = vst [vmem:[#allocation2 + $0x40] sm:$0xff] %v2402_v27  ;;  %438 = vst [vmem:[#allocation2 + $0x48] sm:$0x3] %v2402_v27  ;;  %v2245_v29 = vld [vmem:[#allocation4 + $0x98] sm:$0xff]   ;;  %v2246_v30 = vld [vmem:[#allocation4 + $0x20] sm:$0xff]   ;;  %s2403_s10 = smov [#allocation7]  }
  0x3f   : > { %1943 = vmatprep.subr.bf16.mxu0 %v2231_v13  ;;  %1905 = vmatprep.subr.bf16.mxu1 %v2232_v14  ;;  %439 = vst [vmem:[#allocation2 + $0x50] sm:$0xff] %v2402_v27  ;;  %440 = vst [vmem:[#allocation2 + $0x58] sm:$0x3] %v2402_v27  ;;  %v2247_v31 = vld [vmem:[#allocation4 + $0xe0] sm:$0xff]   ;;  %v2248_v32 = vld [vmem:[#allocation4 + $0x68] sm:$0xff]   ;;  %s2335_s13 = sshll.u32 %s2403_s10, 4  ;;  %s2336_s13 = int_to_ptr.vmem [resolvable:$false] %s2335_s13 }
  0x40   : > { %441 = vst [vmem:[#allocation2 + $0x60] sm:$0xff] %v2402_v27  ;;  %442 = vst [vmem:[#allocation2 + $0x68] sm:$0x3] %v2402_v27  ;;  %v2249_v33 = vld [vmem:[#allocation4 + $0xa0] sm:$0xff]   ;;  %v2250_v34 = vld [vmem:[#allocation4 + $0x28] sm:$0xff]   ;;  %s2337_s14 = scalar_lea.vmem %s2336_s13, 2048  ;;  %p2338_p2 = scmp.lt.s32.totalorder %s2703_s18, %s2336_s13 }
  0x41   : > { %2082 = vmatmul.mubr.msk.bf16.vlgmr.msra.gmra.mrb[0].mxu0 %vm339_vm0, %v2224_v8  ;;  %443 = vst [vmem:[#allocation2 + $0x70] sm:$0xff] %v2402_v27  ;;  %444 = vst [vmem:[#allocation2 + $0x78] sm:$0x3] %v2402_v27  ;;  %v2252_v35 = vld [vmem:[%s2545_s29 + $0x10] sm:$0xff]   ;;  %v2251_v36 = vld [vmem:[#allocation4 + $0xe8] sm:$0xff]  }
  0x42   : > { %2085 = vmatprep.mubr.msk.bf16.mxu0 %vm339_vm0, %v2225_v10  ;;  %1944 = vmatpush3.bf16.msra.mxu0 %v2233_v15  ;;  %445 = vst [vmem:[#allocation2 + $0x80] sm:$0xff] %v2402_v27  ;;  %446 = vst [vmem:[#allocation2 + $0x88] sm:$0x3] %v2402_v27  ;;  %v2255_v37 = vld [vmem:[%s2545_s29 + $0x18] sm:$0xff]   ;;  %v2253_v38 = vld [vmem:[#allocation4 + $0x70] sm:$0xff]   ;;  %s2331_s29 = scalar_lea.vmem %s2703_s18, 1024 }
  0x43   : > { %1906 = vmatpush3.bf16.msra.mxu1 %v2234_v16  ;;  %1945 = vmatprep.subr.bf16.mxu0 %v2235_v17  ;;  %447 = vst [vmem:[#allocation2 + $0x90] sm:$0xff] %v2402_v27  ;;  %448 = vst [vmem:[#allocation2 + $0x98] sm:$0x3] %v2402_v27  ;;  %v2254_v39 = vld [vmem:[#allocation4 + $0xa8] sm:$0xff]   ;;  %v2256_v40 = vld [vmem:[#allocation4 + $0x30] sm:$0xff]   ;;  %p2332_p6 = scmp.ne.s32.totalorder %s2703_s18, %s2331_s29  ;;  %p2339_p3 = scmp.lt.s32.totalorder %s2337_s14, %s2331_s29 }
  0x44   : > { %1907 = vmatprep.subr.bf16.mxu1 %v2236_v19  ;;  %2095 = vmatprep.mubr.msk.bf16.mxu1 %vm812_vm2, %v2252_v35  ;;  %v2257_v41 = vld [vmem:[#allocation4 + $0xf0] sm:$0xff]   ;;  %v2258_v42 = vld [vmem:[#allocation4 + $0x78] sm:$0xff]   ;;  %v2263_v47 = vld [vmem:[#allocation4 + $0x140] sm:$0xff]  }
  0x45   : > { %2096 = vmatmul.mubr.msk.bf16.gmra.mrb[4].mxu1 %vm812_vm2, %v2255_v37  ;;  %v2259_v43 = vld [vmem:[#allocation4 + $0xb0] sm:$0xff]   ;;  %v2260_v44 = vld [vmem:[#allocation4 + $0x38] sm:$0xff]   ;;  %v2265_v48 = vld [vmem:[#allocation4 + $0x1c0] sm:$0xff]   ;;  %p2333_p10 = pnand %p2332_p6, %p2774_p9  ;;  %p2340_p4 = por %p2339_p3, %p2338_p2 }
  0x46   : > { %1946 = vmatpush3.bf16.msra.mxu0 %v2237_v20  ;;  %v2261_v45 = vld [vmem:[#allocation4 + $0xf8] sm:$0xff]   ;;  %v1790_v49 = vld [vmem:[%s2762_s5] ss:$0 sm:$0xff]  ;;  %v474_v58 = vld [vmem:[#allocation2 + $0x1] sm:$0xff] }
  0x47   : > { %1908 = vmatpush3.bf16.msra.mxu1 %v2238_v21  ;;  %1947 = vmatprep.subr.bf16.mxu0 %v2239_v22  ;;  %v2262_v46 = vld [vmem:[#allocation4 + $0xb8] sm:$0xff]   ;;  %v2264_v15 = vld [vmem:[#allocation4 + $0x100] sm:$0xff]   ;;  %v2266_v20 = vld [vmem:[#allocation4 + $0x148] sm:$0xff]   ;;  %p2334_p12 = pneg %p2333_p10 }
  0x48   : > { %1909 = vmatprep.subr.bf16.mxu1 %v2240_v23  ;;  %v2270_v35 = vld [vmem:[#allocation4 + $0x150] sm:$0xff]  }
  0x49   : > { %2086 = vmatmul.mubr.msk.bf16.gmra.mrb[4].mxu0 %vm339_vm0, %v2226_v18  ;;  %v490_v18 = vld [vmem:[#allocation2 + $0x2] sm:$0xff]  ;;  %v2272_v37 = vld [vmem:[#allocation4 + $0x110] sm:$0xff]   ;;  %p2341_p7 = pnand %p2340_p4, %p2334_p12 }
  0x4a   : > { %1948 = vmatpush3.bf16.msra.mxu0 %v2241_v24 }
  0x4b   : > { %1910 = vmatpush3.bf16.msra.mxu1 %v2242_v25  ;;  %1949 = vmatprep.subr.bf16.mxu0 %v2243_v26  ;;  %v2267_v26 = vld [vmem:[#allocation4 + $0x180] sm:$0xff]  }
  0x4c   : > { %1911 = vmatprep.subr.bf16.mxu1 %v2244_v28 }
  0x4e   : > { %1950 = vmatpush3.bf16.msra.mxu0 %v2245_v29 }
  0x4f   : > { %1912 = vmatpush3.bf16.msra.mxu1 %v2246_v30  ;;  %1951 = vmatprep.subr.bf16.mxu0 %v2247_v31  ;;  %v2268_v31 = vld [vmem:[#allocation4 + $0x108] sm:$0xff]  }
  0x50   : > { %1913 = vmatprep.subr.bf16.mxu1 %v2248_v32  ;;  %v2269_v32 = vld [vmem:[#allocation4 + $0x1c8] sm:$0xff]  }
  0x52   : > { %1952 = vmatpush3.bf16.msra.mxu0 %v2249_v33 }
  0x53   : > { %1914 = vmatpush3.bf16.msra.mxu1 %v2250_v34  ;;  %1953 = vmatprep.subr.bf16.mxu0 %v2251_v36  ;;  %v2271_v36 = vld [vmem:[#allocation4 + $0x188] sm:$0xff]  }
  0x54   : > { %1915 = vmatprep.subr.bf16.mxu1 %v2253_v38 }
  0x56   : > { %1954 = vmatpush3.bf16.msra.mxu0 %v2254_v39 }
  0x57   : > { %1916 = vmatpush3.bf16.msra.mxu1 %v2256_v40  ;;  %1955 = vmatprep.subr.bf16.mxu0 %v2257_v41  ;;  %v2273_v40 = vld [vmem:[#allocation4 + $0x1d0] sm:$0xff]   ;;  %v2274_v41 = vld [vmem:[#allocation4 + $0x158] sm:$0xff]  }
  0x58   : > { %1917 = vmatprep.subr.bf16.mxu1 %v2258_v42 }
  0x5a   : > { %1956 = vmatpush3.bf16.msra.mxu0 %v2259_v43 }
  0x5b   : > { %1918 = vmatpush3.bf16.msra.mxu1 %v2260_v44  ;;  %1957 = vmatprep.subr.bf16.mxu0 %v2261_v45  ;;  %v2275_v45 = vld [vmem:[#allocation4 + $0x190] sm:$0xff]  }
  0x5c   : > { %1983 = vmatprep.subr.bf16.mxu1 %v2263_v47 }
  0x5e   : > { %1958 = vmatpush3.bf16.msra.mxu0 %v2262_v46 }
  0x5f   : > { %2023 = vmatprep.subr.bf16.mxu0 %v2265_v48  ;;  %v2276_v48 = vld [vmem:[#allocation4 + $0x118] sm:$0xff]  }
 0x114   : > { %v2083_v50 = vpop.f32.mrb[0].mxu0 }
 0x115   : > { %v399_v51 = vadd.f32 %v2083_v50, %v1790_v49  ;;  %v390_v52 = vpop.f32.mrb[1].mxu0  ;;  %v2278_v50 = vld [vmem:[#allocation4 + $0x160] sm:$0xff]  }
 0x116   : > { %v391_v53 = vadd.f32 %v1790_v49, %v390_v52  ;;  %v2084_v54 = vpop.f32.mrb[2].mxu0  ;;  %v2280_v52 = vld [vmem:[#allocation4 + $0x120] sm:$0xff]  }
 0x117   : > { %v2587_v55 = vmax.f32 %v399_v51, 0.0  ;;  %v402_v56 = vadd.f32 %v2084_v54, %v1790_v49  ;;  %v393_v57 = vpop.f32.mrb[3].mxu0  ;;  %v2279_v51 = vld [vmem:[#allocation4 + $0x198] sm:$0xff]  }
 0x118   : > { %v2589_v59 = vmax.f32 %v391_v53, 0.0  ;;  %v394_v60 = vadd.f32 %v1790_v49, %v393_v57  ;;  %v2282_v57 = vld [vmem:[#allocation4 + $0x168] sm:$0xff]  }
 0x119   : > { %452 = vst [vmem:[#allocation2 + $0x31] sm:$0xff] %v2587_v55  ;;  %v2592_v61 = vmax.f32 %v402_v56, 0.0  ;;  %v2281_v56 = vld [vmem:[#allocation4 + $0x1e0] sm:$0xff]  }
 0x11a   : > { %450 = vst [vmem:[#allocation2 + $0x11] sm:$0xff] %v2589_v59  ;;  %v2595_v62 = vmax.f32 %v394_v60, 0.0  ;;  %v482_v63 = vpack.c.bf16 %v2589_v59, %v474_v58 }
 0x11b   : > { %453 = vst [vmem:[#allocation2 + $0x41] sm:$0xff] %v2592_v61  ;;  %v531_v0 = vpack.c.bf16 %v2592_v61, %v2587_v55 }
 0x11c   : > { %451 = vst [vmem:[#allocation2 + $0x21] sm:$0xff] %v2595_v62  ;;  %v2087_v1 = vpop.f32.mrb[4].mxu0  ;;  %1357 = vmatprep.mubr.bf16.mxu1 %v482_v63  ;;  %v2604_v2 = vpack.c.bf16 %v2587_v55, %v2595_v62  ;;  %v530_v3 = vpack.c.bf16 %v2595_v62, %v2589_v59  ;;  %v2299_v59 = vld [vmem:[#allocation4 + $0x220] sm:$0xff]  }
 0x11d   : > { %v415_v4 = vadd.f32 %v2087_v1, %v1790_v49  ;;  %v406_v5 = vpop.f32.mrb[5].mxu0  ;;  %v2283_v1 = vld [vmem:[#allocation4 + $0x1a0] sm:$0xff]  }
 0x11e   : > { %v407_v6 = vadd.f32 %v1790_v49, %v406_v5  ;;  %v2088_v7 = vpop.f32.mrb[6].mxu0  ;;  %v2284_v5 = vld [vmem:[#allocation4 + $0x128] sm:$0xff]  }
 0x11f   : > { %v2608_v8 = vmax.f32 %v415_v4, 0.0  ;;  %v418_v9 = vadd.f32 %v2088_v7, %v1790_v49  ;;  %v409_v10 = vpop.f32.mrb[7].mxu0 }
 0x120   : > { %v2610_v11 = vmax.f32 %v407_v6, 0.0  ;;  %v410_v12 = vadd.f32 %v1790_v49, %v409_v10  ;;  %v508_v30 = vld [vmem:[#allocation2 + $0x30] sm:$0xff]  ;;  %v2277_v49 = vld [vmem:[#allocation4 + $0x1d8] sm:$0xff]   ;;  %v2285_v6 = vld [vmem:[#allocation4 + $0x1e8] sm:$0xff]  }
 0x121   : > { %456 = vst [vmem:[#allocation2 + $0x71] sm:$0xff] %v2608_v8  ;;  %v2613_v13 = vmax.f32 %v418_v9, 0.0  ;;  %v459_v14 = vld [vmem:[#allocation2 + $0x10] sm:$0xff]  ;;  %v2287_v10 = vld [vmem:[#allocation4 + $0x1a8] sm:$0xff]  }
 0x122   : > { %454 = vst [vmem:[#allocation2 + $0x51] sm:$0xff] %v2610_v11  ;;  %v2616_v16 = vmax.f32 %v410_v12, 0.0  ;;  %v466_v17 = vpack.c.bf16 %v459_v14, %v2402_v27  ;;  %v2619_v19 = vld [vmem:[#allocation2 + $0x12] sm:$0xff]  ;;  %v2623_v21 = vpack.c.bf16 %v2610_v11, %v2592_v61  ;;  %v509_v23 = vld [vmem:[#allocation2 + $0x40] sm:$0xff] }
 0x123   : > { %457 = vst [vmem:[#allocation2 + $0x81] sm:$0xff] %v2613_v13  ;;  %v507_v22 = vld [vmem:[#allocation2 + $0x20] sm:$0xff]  ;;  %v533_v24 = vpack.c.bf16 %v2613_v13, %v2608_v8  ;;  %v498_v29 = vpack.c.bf16 %v2619_v19, %v490_v18  ;;  %v515_v34 = vpack.c.bf16 %v509_v23, %v508_v30  ;;  %v2642_v44 = vld [vmem:[#allocation2 + $0x32] sm:$0xff] }
 0x124   : > { %455 = vst [vmem:[#allocation2 + $0x61] sm:$0xff] %v2616_v16  ;;  %1358 = vmatmul.mubr.bf16.vlgmr.msra.gmra.mrb[8].mxu1 %v466_v17  ;;  %v514_v25 = vpack.c.bf16 %v507_v22, %v459_v14  ;;  %v2631_v28 = vpack.c.bf16 %v2608_v8, %v2616_v16  ;;  %v532_v33 = vpack.c.bf16 %v2616_v16, %v2610_v11  ;;  %v2639_v39 = vld [vmem:[#allocation2 + $0x22] sm:$0xff]  ;;  %v2286_v9 = vld [vmem:[#allocation4 + $0x170] sm:$0xff]  }
 0x125   : > { %1984 = vmatpush3.bf16.msra.mxu1 %v2264_v15  ;;  %1365 = vmatprep.mubr.bf16.mxu1 %v2604_v2  ;;  %v2637_v38 = vpack.c.bf16 %v508_v30, %v507_v22  ;;  %v2647_v47 = vpack.c.bf16 %v2642_v44, %v2639_v39  ;;  %v494_v63 = vld [vmem:[#allocation2 + $0x42] sm:$0xff]  ;;  %v2288_v12 = vld [vmem:[#allocation4 + $0x130] sm:$0xff]   ;;  %v546_v22 = vpack.c.bf16 %v2639_v39, %v2619_v19 }
 0x126   : > { %1422 = vmatprep.mubr.bf16.mxu0 %v514_v25  ;;  %1985 = vmatprep.subr.bf16.mxu1 %v2266_v20  ;;  %v2289_v14 = vld [vmem:[#allocation4 + $0x1f0] sm:$0xff]   ;;  %v2290_v20 = vld [vmem:[#allocation4 + $0x178] sm:$0xff]   ;;  %v2295_v30 = vld [vmem:[#allocation4 + $0x200] sm:$0xff]  }
 0x127   : > { %1423 = vmatmul.mubr.bf16.vlgmr.msra.gmra.mrb[8].mxu0 %v498_v29  ;;  %v2293_v29 = vld [vmem:[#allocation4 + $0x1f8] sm:$0xff]   ;;  %v2296_v19 = vld [vmem:[#allocation4 + $0x208] sm:$0xff]   ;;  %v2301_v61 = vld [vmem:[#allocation4 + $0x230] sm:$0xff]  }
 0x128   : > { %1430 = vmatprep.mubr.bf16.mxu0 %v515_v34  ;;  %2024 = vmatpush3.bf16.msra.mxu0 %v2267_v26  ;;  %v512_v58 = vld [vmem:[#allocation2 + $0x70] sm:$0xff]  ;;  %v2292_v26 = vld [vmem:[#allocation4 + $0x138] sm:$0xff]  }
 0x129   : > { %1986 = vmatpush3.bf16.msra.mxu1 %v2268_v31  ;;  %2025 = vmatprep.subr.bf16.mxu0 %v2269_v32  ;;  %v510_v42 = vld [vmem:[#allocation2 + $0x50] sm:$0xff]  ;;  %v2294_v31 = vld [vmem:[#allocation4 + $0x1b8] sm:$0xff]   ;;  %v547_v32 = vpack.c.bf16 %v494_v63, %v2642_v44 }
 0x12a   : > { %1987 = vmatprep.subr.bf16.mxu1 %v2270_v35  ;;  %v2650_v53 = vpack.c.bf16 %v510_v42, %v509_v23  ;;  %v2652_v54 = vld [vmem:[#allocation2 + $0x52] sm:$0xff]  ;;  %v2654_v60 = vld [vmem:[#allocation2 + $0x80] sm:$0xff] }
 0x12b   : > { %v511_v43 = vld [vmem:[#allocation2 + $0x60] sm:$0xff]  ;;  %v2659_v4 = vpack.c.bf16 %v2652_v54, %v494_v63  ;;  %v517_v7 = vpack.c.bf16 %v2654_v60, %v512_v58  ;;  %v497_v18 = vld [vmem:[#allocation2 + $0x72] sm:$0xff]  ;;  %v566_v11 = vpack.c.bf16 %v2402_v27, %v2654_v60 }
 0x12c   : > { %2026 = vmatpush3.bf16.msra.mxu0 %v2271_v36  ;;  %1366 = vmatmul.mubr.bf16.gmra.mrb[12].mxu1 %v2637_v38  ;;  %v516_v46 = vpack.c.bf16 %v511_v43, %v510_v42  ;;  %v469_v15 = vpack.c.bf16 %v512_v58, %v511_v43  ;;  %v496_v17 = vld [vmem:[#allocation2 + $0x62] sm:$0xff]  ;;  %v2291_v23 = vld [vmem:[#allocation4 + $0x1b0] sm:$0xff]  }
 0x12d   : > { %1988 = vmatpush3.bf16.msra.mxu1 %v2272_v37  ;;  %1373 = vmatprep.mubr.bf16.mxu1 %v2623_v21  ;;  %v501_v25 = vpack.c.bf16 %v497_v18, %v496_v17  ;;  %v2297_v34 = vld [vmem:[#allocation4 + $0x210] sm:$0xff]   ;;  %v548_v35 = vpack.c.bf16 %v496_v17, %v2652_v54  ;;  %v545_v62 = vld [vmem:[#allocation2 + $0x82] sm:$0xff] }
 0x12e   : > { %2027 = vmatprep.subr.bf16.mxu0 %v2273_v40  ;;  %1989 = vmatprep.subr.bf16.mxu1 %v2274_v41  ;;  %v578_v36 = vld [vmem:[#allocation2 + $0x91] sm:$0xff] }
 0x12f   : > { %1431 = vmatmul.mubr.bf16.gmra.mrb[12].mxu0 %v2647_v47  ;;  %v582_v55 = vpack.c.bf16 %v578_v36, %v2613_v13  ;;  %v594_v16 = vld [vmem:[#allocation2 + $0x92] sm:$0xff] }
 0x130   : > { %2028 = vmatpush3.bf16.msra.mxu0 %v2275_v45  ;;  %1438 = vmatprep.mubr.bf16.mxu0 %v516_v46 }
 0x131   : > { %1990 = vmatpush3.bf16.msra.mxu1 %v2276_v48  ;;  %2029 = vmatprep.subr.bf16.mxu0 %v2277_v49 }
 0x132   : > { %1991 = vmatprep.subr.bf16.mxu1 %v2278_v50 }
 0x134   : > { %2030 = vmatpush3.bf16.msra.mxu0 %v2279_v51  ;;  %1374 = vmatmul.mubr.bf16.gmra.mrb[16].mxu1 %v2650_v53 }
 0x135   : > { %1992 = vmatpush3.bf16.msra.mxu1 %v2280_v52  ;;  %1381 = vmatprep.mubr.bf16.mxu1 %v2631_v28 }
 0x136   : > { %2031 = vmatprep.subr.bf16.mxu0 %v2281_v56  ;;  %1993 = vmatprep.subr.bf16.mxu1 %v2282_v57 }
 0x137   : > { %1439 = vmatmul.mubr.bf16.gmra.mrb[16].mxu0 %v2659_v4 }
 0x138   : > { %1446 = vmatprep.mubr.bf16.mxu0 %v517_v7  ;;  %2032 = vmatpush3.bf16.msra.mxu0 %v2283_v1 }
 0x139   : > { %1994 = vmatpush3.bf16.msra.mxu1 %v2284_v5  ;;  %2033 = vmatprep.subr.bf16.mxu0 %v2285_v6 }
 0x13a   : > { %1995 = vmatprep.subr.bf16.mxu1 %v2286_v9 }
 0x13c   : > { %2034 = vmatpush3.bf16.msra.mxu0 %v2287_v10  ;;  %1382 = vmatmul.mubr.bf16.gmra.mrb[20].mxu1 %v469_v15 }
 0x13d   : > { %1996 = vmatpush3.bf16.msra.mxu1 %v2288_v12  ;;  %1487 = vmatprep.mubr.bf16.mxu1 %v546_v22 }
 0x13e   : > { %2035 = vmatprep.subr.bf16.mxu0 %v2289_v14  ;;  %1997 = vmatprep.subr.bf16.mxu1 %v2290_v20 }
 0x13f   : > { %1447 = vmatmul.mubr.bf16.gmra.mrb[20].mxu0 %v501_v25 }
 0x140   : > { %2036 = vmatpush3.bf16.msra.mxu0 %v2291_v23  ;;  %1552 = vmatprep.mubr.bf16.mxu0 %v2604_v2  ;;  %v2298_v2 = vld [vmem:[#allocation4 + $0x218] sm:$0xff]  }
 0x141   : > { %1998 = vmatpush3.bf16.msra.mxu1 %v2292_v26  ;;  %2037 = vmatprep.subr.bf16.mxu0 %v2293_v29 }
 0x142   : > { %2099 = vmatprep.subr.bf16.mxu1 %v2295_v30 }
 0x144   : > { %2038 = vmatpush3.bf16.msra.mxu0 %v2294_v31  ;;  %1488 = vmatmul.mubr.bf16.vlgmr.msra.gmra.mrb[24].mxu1 %v530_v3  ;;  %v2300_v3 = vld [vmem:[#allocation4 + $0x228] sm:$0xff]  }
 0x145   : > { %2100 = vmatpush3.bf16.msra.mxu1 %v2295_v30  ;;  %1495 = vmatprep.mubr.bf16.mxu1 %v547_v32 }
 0x146   : > { %2101 = vmatprep.subr.bf16.mxu1 %v2296_v19 }
 0x147   : > { %1553 = vmatmul.mubr.bf16.vlgmr.msra.gmra.mrb[24].mxu0 %v2637_v38 }
 0x148   : > { %1560 = vmatprep.mubr.bf16.mxu0 %v2623_v21  ;;  %v549_v21 = vpack.c.bf16 %v545_v62, %v497_v18 }
 0x149   : > { %2102 = vmatpush3.bf16.msra.mxu1 %v2296_v19 }
 0x14a   : > { %2103 = vmatprep.subr.bf16.mxu1 %v2297_v34 }
 0x14c   : > { %1496 = vmatmul.mubr.bf16.gmra.mrb[28].mxu1 %v531_v0  ;;  %v2302_v0 = vld [vmem:[#allocation4 + $0x238] sm:$0xff]  }
 0x14d   : > { %2104 = vmatpush3.bf16.msra.mxu1 %v2297_v34  ;;  %1503 = vmatprep.mubr.bf16.mxu1 %v548_v35 }
 0x14e   : > { %2105 = vmatprep.subr.bf16.mxu1 %v2298_v2 }
 0x14f   : > { %1561 = vmatmul.mubr.bf16.gmra.mrb[28].mxu0 %v2650_v53 }
 0x150   : > { %1568 = vmatprep.mubr.bf16.mxu0 %v2631_v28  ;;  %v598_v28 = vpack.c.bf16 %v594_v16, %v545_v62 }
 0x151   : > { %2106 = vmatpush3.bf16.msra.mxu1 %v2298_v2 }
 0x152   : > { %2107 = vmatprep.subr.bf16.mxu1 %v2299_v59 }
 0x154   : > { %1504 = vmatmul.mubr.bf16.gmra.mrb[32].mxu1 %v532_v33 }
 0x155   : > { %2108 = vmatpush3.bf16.msra.mxu1 %v2299_v59  ;;  %1511 = vmatprep.mubr.bf16.mxu1 %v549_v21 }
 0x156   : > { %2109 = vmatprep.subr.bf16.mxu1 %v2300_v3 }
 0x157   : > { %1569 = vmatmul.mubr.bf16.gmra.mrb[32].mxu0 %v469_v15 }
 0x158   : > { %1576 = vmatprep.mubr.bf16.mxu0 %v582_v55 }
 0x159   : > { %2110 = vmatpush3.bf16.msra.mxu1 %v2300_v3 }
 0x15a   : > { %2111 = vmatprep.subr.bf16.mxu1 %v2301_v61 }
 0x15c   : > { %1512 = vmatmul.mubr.bf16.gmra.mrb[36].mxu1 %v533_v24 }
 0x15d   : > { %2112 = vmatpush3.bf16.msra.mxu1 %v2301_v61  ;;  %2115 = vmatprep.mubr.bf16.mxu1 %v2647_v47 }
 0x15e   : > { %2113 = vmatprep.subr.bf16.mxu1 %v2302_v0 }
 0x15f   : > { %1577 = vmatmul.mubr.bf16.gmra.mrb[36].mxu0 %v566_v11 }
 0x161   : > { %2114 = vmatpush3.bf16.msra.mxu1 %v2302_v0 }
 0x164   : > { %2116 = vmatmul.mubr.bf16.vlgmr.msra.gmra.mrb[0].mxu1 %v2659_v4 }
 0x165   : > { %2119 = vmatprep.mubr.bf16.mxu1 %v501_v25 }
 0x16c   : > { %2120 = vmatmul.mubr.bf16.gmra.mrb[4].mxu1 %v598_v28 }
 0x1f7   : > { %v1919_v33 = vpop.f32.mrb[8].mxu1 }
 0x1f8   : > { %v1920_v37 = vpop.f32.mrb[9].mxu1 }
 0x1f9   : > { %v1921_v38 = vadd.f32 %v1920_v37, %v1919_v33  ;;  %v1922_v8 = vpop.f32.mrb[10].mxu1 }
 0x1fa   : > { %v1959_v13 = vpop.f32.mrb[8].mxu0  ;;  %v1923_v24 = vpop.f32.mrb[11].mxu1 }
 0x1fb   : > { %v1924_v39 = vadd.f32 %v1923_v24, %v1922_v8  ;;  %v1960_v40 = vpop.f32.mrb[9].mxu0 }
 0x1fc   : > { %v1961_v41 = vadd.f32 %v1960_v40, %v1959_v13  ;;  %v1962_v42 = vpop.f32.mrb[10].mxu0 }
 0x1fd   : > { %v1963_v27 = vpop.f32.mrb[11].mxu0 }
 0x1fe   : > { %v2127_v43 = vadd.f32 %v1961_v41, %v1921_v38  ;;  %v1964_v44 = vadd.f32 %v1963_v27, %v1962_v42 }
 0x1ff   : > { %v1925_v45 = vpop.f32.mrb[12].mxu1 }
 0x200   : > { %v2135_v46 = vadd.f32 %v1964_v44, %v1924_v39  ;;  %v1926_v47 = vpop.f32.mrb[13].mxu1 }
 0x201   : > { %v1927_v48 = vadd.f32 %v1926_v47, %v1925_v45  ;;  %v1928_v49 = vpop.f32.mrb[14].mxu1 }
 0x202   : > { %v1965_v50 = vpop.f32.mrb[12].mxu0  ;;  %v1929_v51 = vpop.f32.mrb[15].mxu1 }
 0x203   : > { %v1930_v52 = vadd.f32 %v1929_v51, %v1928_v49  ;;  %v1966_v53 = vpop.f32.mrb[13].mxu0 }
 0x204   : > { %v1967_v54 = vadd.f32 %v1966_v53, %v1965_v50  ;;  %v1968_v56 = vpop.f32.mrb[14].mxu0 }
 0x205   : > { %v1969_v57 = vpop.f32.mrb[15].mxu0 }
 0x206   : > { %v2123_v58 = vadd.f32 %v1967_v54, %v1927_v48  ;;  %v1970_v60 = vadd.f32 %v1969_v57, %v1968_v56 }
 0x207   : > { %v1931_v63 = vpop.f32.mrb[16].mxu1 }
 0x208   : > { %v2131_v1 = vadd.f32 %v1970_v60, %v1930_v52  ;;  %v1932_v4 = vpop.f32.mrb[17].mxu1 }
 0x209   : > { %v1933_v5 = vadd.f32 %v1932_v4, %v1931_v63  ;;  %v1934_v6 = vpop.f32.mrb[18].mxu1 }
 0x20a   : > { %v1971_v7 = vpop.f32.mrb[16].mxu0  ;;  %v1935_v9 = vpop.f32.mrb[19].mxu1 }
 0x20b   : > { %v1936_v10 = vadd.f32 %v1935_v9, %v1934_v6  ;;  %v1972_v12 = vpop.f32.mrb[17].mxu0 }
 0x20c   : > { %v1973_v14 = vadd.f32 %v1972_v12, %v1971_v7  ;;  %v1974_v15 = vpop.f32.mrb[18].mxu0 }
 0x20d   : > { %v1975_v17 = vpop.f32.mrb[19].mxu0 }
 0x20e   : > { %v2143_v18 = vadd.f32 %v1973_v14, %v1933_v5  ;;  %v1976_v20 = vadd.f32 %v1975_v17, %v1974_v15 }
 0x20f   : > { %v1937_v22 = vpop.f32.mrb[20].mxu1 }
 0x210   : > { %v2151_v23 = vadd.f32 %v1976_v20, %v1936_v10  ;;  %v1938_v25 = vpop.f32.mrb[21].mxu1 }
 0x211   : > { %v1939_v26 = vadd.f32 %v1938_v25, %v1937_v22  ;;  %v1940_v29 = vpop.f32.mrb[22].mxu1 }
 0x212   : > { %v1977_v30 = vpop.f32.mrb[20].mxu0  ;;  %v1941_v31 = vpop.f32.mrb[23].mxu1 }
 0x213   : > { %v1942_v19 = vadd.f32 %v1941_v31, %v1940_v29  ;;  %v1978_v32 = vpop.f32.mrb[21].mxu0 }
 0x214   : > { %v1979_v34 = vadd.f32 %v1978_v32, %v1977_v30  ;;  %v1980_v2 = vpop.f32.mrb[22].mxu0 }
 0x215   : > { %v1981_v35 = vpop.f32.mrb[23].mxu0 }
 0x216   : > { %v2139_v59 = vadd.f32 %v1979_v34, %v1939_v26  ;;  %v1982_v62 = vadd.f32 %v1981_v35, %v1980_v2 }
 0x217   : > { %v1999_v3 = vpop.f32.mrb[24].mxu1 }
 0x218   : > { %v2147_v21 = vadd.f32 %v1982_v62, %v1942_v19  ;;  %v2000_v36 = vpop.f32.mrb[25].mxu1 }
 0x219   : > { %v2001_v55 = vadd.f32 %v2000_v36, %v1999_v3  ;;  %v2002_v61 = vpop.f32.mrb[26].mxu1 }
 0x21a   : > { %v2039_v0 = vpop.f32.mrb[24].mxu0  ;;  %v2003_v11 = vpop.f32.mrb[27].mxu1 }
 0x21b   : > { %v2128_v16 = vadd.f32 %v2127_v43, %v2001_v55  ;;  %v2004_v28 = vadd.f32 %v2003_v11, %v2002_v61  ;;  %v2040_v33 = vpop.f32.mrb[25].mxu0  ;;  %v1882_v55 = vld [vmem:[%s2762_s5 + $0x1] ss:$0 sm:$0xff] }
 0x21c   : > { %v2041_v37 = vadd.f32 %v2040_v33, %v2039_v0  ;;  %v2042_v38 = vpop.f32.mrb[26].mxu0 }
 0x21d   : > { %v2136_v8 = vadd.f32 %v2135_v46, %v2004_v28  ;;  %v2043_v13 = vpop.f32.mrb[27].mxu0 }
 0x21e   : > { %v2044_v24 = vadd.f32 %v2043_v13, %v2042_v38  ;;  %v2129_v39 = vadd.f32 %v2128_v16, %v2041_v37 }
 0x21f   : > { %v2005_v40 = vpop.f32.mrb[28].mxu1 }
 0x220   : > { %v2006_v41 = vpop.f32.mrb[29].mxu1  ;;  %v2137_v42 = vadd.f32 %v2136_v8, %v2044_v24 }
 0x221   : > { %v2007_v27 = vadd.f32 %v2006_v41, %v2005_v40  ;;  %v2008_v44 = vpop.f32.mrb[30].mxu1 }
 0x222   : > { %v2045_v45 = vpop.f32.mrb[28].mxu0  ;;  %v2009_v47 = vpop.f32.mrb[31].mxu1 }
 0x223   : > { %v2124_v48 = vadd.f32 %v2123_v58, %v2007_v27  ;;  %v2010_v49 = vadd.f32 %v2009_v47, %v2008_v44  ;;  %v2046_v50 = vpop.f32.mrb[29].mxu0 }
 0x224   : > { %v2047_v51 = vadd.f32 %v2046_v50, %v2045_v45  ;;  %v2048_v43 = vpop.f32.mrb[30].mxu0 }
 0x225   : > { %v2132_v52 = vadd.f32 %v2131_v1, %v2010_v49  ;;  %v2049_v53 = vpop.f32.mrb[31].mxu0 }
 0x226   : > { %v2050_v54 = vadd.f32 %v2049_v53, %v2048_v43  ;;  %v2125_v56 = vadd.f32 %v2124_v48, %v2047_v51 }
 0x227   : > { %v2011_v46 = vpop.f32.mrb[32].mxu1 }
 0x228   : > { %v2012_v57 = vpop.f32.mrb[33].mxu1  ;;  %v2133_v60 = vadd.f32 %v2132_v52, %v2050_v54 }
 0x229   : > { %v2013_v63 = vadd.f32 %v2012_v57, %v2011_v46  ;;  %v2014_v4 = vpop.f32.mrb[34].mxu1 }
 0x22a   : > { %v2051_v5 = vpop.f32.mrb[32].mxu0  ;;  %v2015_v6 = vpop.f32.mrb[35].mxu1 }
 0x22b   : > { %v2144_v7 = vadd.f32 %v2143_v18, %v2013_v63  ;;  %v2016_v9 = vadd.f32 %v2015_v6, %v2014_v4  ;;  %v2052_v10 = vpop.f32.mrb[33].mxu0 }
 0x22c   : > { %v2053_v12 = vadd.f32 %v2052_v10, %v2051_v5  ;;  %v2054_v58 = vpop.f32.mrb[34].mxu0 }
 0x22d   : > { %v2152_v14 = vadd.f32 %v2151_v23, %v2016_v9  ;;  %v2055_v15 = vpop.f32.mrb[35].mxu0 }
 0x22e   : > { %v2056_v17 = vadd.f32 %v2055_v15, %v2054_v58  ;;  %v2145_v1 = vadd.f32 %v2144_v7, %v2053_v12 }
 0x22f   : > { %v2017_v20 = vpop.f32.mrb[36].mxu1 }
 0x230   : > { %v2018_v22 = vpop.f32.mrb[37].mxu1  ;;  %v2153_v25 = vadd.f32 %v2152_v14, %v2056_v17 }
 0x231   : > { %v2019_v26 = vadd.f32 %v2018_v22, %v2017_v20  ;;  %v2020_v29 = vpop.f32.mrb[38].mxu1 }
 0x232   : > { %v2057_v30 = vpop.f32.mrb[36].mxu0  ;;  %v2021_v31 = vpop.f32.mrb[39].mxu1 }
 0x233   : > { %v2140_v19 = vadd.f32 %v2139_v59, %v2019_v26  ;;  %v2022_v32 = vadd.f32 %v2021_v31, %v2020_v29  ;;  %v2058_v18 = vpop.f32.mrb[37].mxu0 }
 0x234   : > { %v2059_v34 = vadd.f32 %v2058_v18, %v2057_v30  ;;  %v2060_v2 = vpop.f32.mrb[38].mxu0 }
 0x235   : > { %v2148_v35 = vadd.f32 %v2147_v21, %v2022_v32  ;;  %v2061_v62 = vpop.f32.mrb[39].mxu0 }
 0x236   : > { %v2062_v23 = vadd.f32 %v2061_v62, %v2060_v2  ;;  %v2141_v3 = vadd.f32 %v2140_v19, %v2059_v34 }
 0x237   : > { %v2117_v36 = vpop.f32.mrb[0].mxu1 }
 0x238   : > { %v2126_v61 = vadd.f32 %v2125_v56, %v2117_v36  ;;  %v1619_v0 = vpop.f32.mrb[1].mxu1  ;;  %v2149_v11 = vadd.f32 %v2148_v35, %v2062_v23 }
 0x239   : > { %v2130_v59 = vadd.f32 %v2129_v39, %v1619_v0  ;;  %v2118_v16 = vpop.f32.mrb[2].mxu1 }
 0x23a   : > { %v1657_v28 = vadd.f32 %v2126_v61, %v1882_v55  ;;  %v2134_v33 = vadd.f32 %v2133_v60, %v2118_v16  ;;  %v1622_v37 = vpop.f32.mrb[3].mxu1 }
 0x23b   : > { %v1655_v21 = vadd.f32 %v2130_v59, %v1882_v55  ;;  %v2138_v38 = vadd.f32 %v2137_v42, %v1622_v37 }
 0x23c   : > { %v1665_v8 = vmax.f32 %v1657_v28, 0.0  ;;  %v1658_v13 = vadd.f32 %v2134_v33, %v1882_v55 }
 0x23d   : > { %v1663_v24 = vmax.f32 %v1655_v21, 0.0  ;;  %v1656_v40 = vadd.f32 %v2138_v38, %v1882_v55 }
 0x23e   : > { %1673 = vst [vmem:[%s2695_s9 + $0x10] sm:$0xff] %v1665_v8  ;;  %v1666_v41 = vmax.f32 %v1658_v13, 0.0 }
 0x23f   : > { %1671 = vst [vmem:[%s2695_s9] sm:$0xff] %v1663_v24  ;;  %v1664_v39 = vmax.f32 %v1656_v40, 0.0  ;;  %v2121_v27 = vpop.f32.mrb[4].mxu1 }
 0x240   : > { %1674 = vst [vmem:[%s2695_s9 + $0x18] sm:$0xff] %v1666_v41  ;;  %v2142_v44 = vadd.f32 %v2141_v3, %v2121_v27  ;;  %v1635_v42 = vpop.f32.mrb[5].mxu1 }
 0x241   : > { %1672 = vst [vmem:[%s2695_s9 + $0x8] sm:$0xff] %v1664_v39  ;;  %v2146_v45 = vadd.f32 %v2145_v1, %v1635_v42  ;;  %v2122_v47 = vpop.f32.mrb[6].mxu1 }
 0x242   : > { %v1661_v48 = vadd.f32 %v2142_v44, %v1882_v55  ;;  %v2150_v49 = vadd.f32 %v2149_v11, %v2122_v47  ;;  %v1638_v50 = vpop.f32.mrb[7].mxu1 }
 0x243   : > { %v1659_v51 = vadd.f32 %v2146_v45, %v1882_v55  ;;  %v2154_v43 = vadd.f32 %v2153_v25, %v1638_v50 }
 0x244   : > { %v1669_v52 = vmax.f32 %v1661_v48, 0.0  ;;  %v1662_v53 = vadd.f32 %v2150_v49, %v1882_v55 }
 0x245   : > { %v1667_v54 = vmax.f32 %v1659_v51, 0.0  ;;  %v1660_v56 = vadd.f32 %v2154_v43, %v1882_v55 }
 0x246   : > { %1677 = vst [vmem:[%s2695_s9 + $0x30] sm:$0xff] %v1669_v52  ;;  %v1670_v46 = vmax.f32 %v1662_v53, 0.0 }
 0x247   : > { %1675 = vst [vmem:[%s2695_s9 + $0x20] sm:$0xff] %v1667_v54  ;;  %v1668_v57 = vmax.f32 %v1660_v56, 0.0 }
 0x248   : > { %1678 = vst [vmem:[%s2695_s9 + $0x38] sm:$0xff] %v1670_v46 }
 0x249   : > { %1676 = vst [vmem:[%s2695_s9 + $0x28] sm:$0xff] %v1668_v57 }
 0x24a   : > { %2344 = shalt.err (!%p2341_p7)
}
 0x24b   : > { %s2345_s15 = scalar_lea.hbm %s2710_s28, 1024  ;;  %s2349_s11 = scalar_lea.hbm %s2763_s6, 2048 }
 0x24c   : > { %p2346_p8 = scmp.ne.s32.totalorder %s2710_s28, %s2345_s15  ;;  %p2350_p1 = scmp.lt.u32.totalorder %s2710_s28, %s2763_s6 }
 0x24d   : > { %p2351_p0 = scmp.lt.u32.totalorder %s2349_s11, %s2345_s15  ;;  %p2353_p6 = scmp.lt.u32.totalorder %s2345_s15, %s2710_s28 }
 0x24e   : > { %p2347_p11 = pnand %p2346_p8, %p2774_p9 }
 0x24f   : > { %p2352_p5 = por %p2351_p0, %p2350_p1 }
 0x250   : > { %p2348_p13 = pneg %p2347_p11 }
 0x251   : > { %p2354_p10 = por %p2353_p6, %p2352_p5 }
 0x253   : > { %p2355_p12 = pnand %p2354_p10, %p2348_p13 }
 0x255   : > { %2358 = shalt.err (!%p2355_p12)
}
 0x256   : > { %s2404_s19 = smov 128   ;;  %s2405_s20 = smov 8  }
 0x257   : > { %2169 = dma.vmem_to_hbm [thread:$0]  (%p2774_p9), %s2703_s18, 1024, %s2710_s28, %s2716_s25, %s2404_s19, %s2404_s19, %s2405_s20  }
 0x258 PF: > { %p2181_p2 = scmp.ge.s32.totalorder %s2397_s24, 2  ;;  %s1708_s26 = sand.u32 1, %s2385_s21  }
 0x259   : > { %p2775_p3 = scmp.ne.s32.totalorder %s2768_s8, 0  ;;  %s1709_s29 = scalar_lea.sflag [#allocation6], %s1708_s26 }
 0x25b   : > { %p2176_p4 = pnand %p2181_p2, %p2775_p3 }
 0x25d   : > { %2380 = dma.done.wait (!%p2176_p4), %s1709_s29, 1024  }
 0x25e   : > { %2382 = vsyncadd (!%p2176_p4), %s1709_s29, 4294966272  ;;  %p17_p7 = scmp.ge.s32.totalorder %s2466_s27, 4   ;;  %s2776_s21 = smov %s2389_s22 }
 0x25f   : > { %s2777_s22 = smov %s2393_s23  ;;  %s2778_s23 = smov %s2477_s30 }
 0x260   : > { %s2779_s24 = smov %s2466_s27  ;;  %19 = sbr.rel (!%p17_p7) target bundleno = 4 (0x4), region = 89 }
 0x267   :  { %1714 = vsyncpa [#allocation5], 1 }
 0x268   :  { %1716 = vsyncpa [#allocation5 + $0x1], 1 }
 0x269   :  { %1717 = vsyncpa [#allocation6], 1 }
 0x26a   :  { %1719 = vsyncpa [#allocation6 + $0x1], 1 }

</bundles_post_ra>
